<compile_context>
chip_gen: v6e
topology: v6e:2x2x1
jax: 0.10.0
libtpu: 0.0.40
codegen_flags: <defaults>
</compile_context>

<pallas_src>
import math

import jax
import jax.numpy as jnp
from jax.experimental import pallas as pl
from jax.experimental.pallas import tpu as pltpu


def _copy_kernel(x_ref, o_ref):
    # Identity copy of the current (tile_r, cols) tile — pure DMA streaming.
    o_ref[...] = x_ref[...]


def _round_up(x, m):
    return ((x + m - 1) // m) * m


def _pick_cols(total):
    """Pick a lane-dense column width (multiple of 128, <= 2048).

    Prefer a width that tiles `total` exactly into a row count divisible by 8
    (no padding at all); otherwise fall back to the widest width <= total,
    and finally 128 for tiny inputs (those get padded).
    """
    for cols in (2048, 1024, 512, 256, 128):
        if total % cols == 0 and (total // cols) % 8 == 0:
            return cols
    for cols in (2048, 1024, 512, 256, 128):
        if cols <= total:
            return cols
    return 128


def _materializing_copy(x):
    """Pallas identity copy of `x` returning a fresh buffer (optional path)."""
    dtype = x.dtype
    orig_shape = x.shape
    flat = jnp.ravel(x)
    total = flat.shape[0]

    cols = _pick_cols(total)
    rows = pl.cdiv(total, cols)

    # Row tile: multiple of 8 sublanes, capped so a single tile buffer is
    # <= 2 MiB (=> <= 8 MiB for double-buffered input + output).
    bytes_per_elem = jnp.dtype(dtype).itemsize
    max_tile_bytes = 2 * 1024 * 1024
    vmem_cap_rows = max(8, max_tile_bytes // (cols * bytes_per_elem))
    tile_r = min(512, (vmem_cap_rows // 8) * 8, _round_up(rows, 8))
    tile_r = max(8, tile_r)

    padded_rows = _round_up(rows, tile_r)
    padded_total = padded_rows * cols
    if padded_total != total:
        flat = jnp.pad(flat, (0, padded_total - total))
    x2d = flat.reshape(padded_rows, cols)

    grid = (padded_rows // tile_r,)
    y2d = pl.pallas_call(
        _copy_kernel,
        out_shape=jax.ShapeDtypeStruct((padded_rows, cols), dtype),
        grid_spec=pltpu.PrefetchScalarGridSpec(
            num_scalar_prefetch=0,
            grid=grid,
            in_specs=[pl.BlockSpec((tile_r, cols), lambda i: (i, 0))],
            out_specs=pl.BlockSpec((tile_r, cols), lambda i: (i, 0)),
        ),
        compiler_params=pltpu.CompilerParams(
            dimension_semantics=("parallel",),
        ),
    )(x2d)

    y_flat = y2d.reshape(padded_total)
    if padded_total != total:
        y_flat = y_flat[:total]
    return y_flat.reshape(orig_shape)


class Reshape:
    """JAX/Pallas equivalent of the PyTorch Reshape module.

    Default forward pass is a zero-cost jnp.reshape (metadata-only, identical
    semantics to torch .view on a contiguous tensor).  Pass materialize=True
    only when a physically distinct output buffer is required; that path runs
    the tiled Pallas identity-copy kernel.
    """

    def __init__(self, *args, materialize=False):
        self.shape = tuple(args)
        self.materialize = materialize

    def __call__(self, x):
        batch = x.shape[0]
        inner = math.prod(x.shape[1:])
        target_inner = math.prod(self.shape)
        assert inner == target_inner, (
            f"cannot view {x.shape} as {(batch,) + self.shape}"
        )
        if self.materialize:
            x = _materializing_copy(x)
        # Metadata-only reshape, same semantics as torch .view on a contiguous
        # NCHW tensor.
        return jnp.reshape(x, (batch,) + self.shape)


if __name__ == "__main__":
    key = jax.random.PRNGKey(0)
    # Small NCHW input consistent with a GAN feature map
    x = jax.random.normal(key, (2, 4, 16, 16), dtype=jnp.float32)

    # Reshape (2, 4, 16, 16) -> (2, 16, 64), matching torch:
    #   Reshape(16, 64)(x) == x.view(2, 16, 64)
    ref = jnp.reshape(x, (2, 16, 64))

    # Default (recommended) path: zero-cost metadata reshape, no kernel launch.
    y_fast = Reshape(16, 64)(x)
    y_fast = jax.block_until_ready(y_fast)
    assert y_fast.shape == (2, 16, 64)
    assert y_fast.dtype == x.dtype
    assert bool(jnp.all(y_fast == ref))

    # Materializing path: exercise the tiled Pallas identity-copy kernel.
    y_copy = Reshape(16, 64, materialize=True)(x)
    y_copy = jax.block_until_ready(y_copy)
    assert y_copy.shape == (2, 16, 64)
    assert y_copy.dtype == x.dtype
    assert bool(jnp.all(y_copy == ref))

    print("KERNEL_OK")
</pallas_src>

<mosaic_0001>
module attributes {stable_mosaic.version = 11 : i64} {
  func.func @_copy_kernel(%arg0: i32, %arg1: memref<8x256xf32, #tpu.memory_space<vmem>>, %arg2: memref<8x256xf32, #tpu.memory_space<vmem>>) attributes {dimension_semantics = [#tpu.dimension_semantics<parallel>], iteration_bounds = array<i64: 1>, scalar_prefetch = 0 : i64, scratch_operands = 0 : i64, tpu.core_type = #tpu.core_type<tc>, window_params = [{transform_indices = @transform_0, window_bounds = array<i64: 8, 256>}, {transform_indices = @transform_1, window_bounds = array<i64: 8, 256>}]} {
    %c0 = arith.constant 0 : index
    %c0_0 = arith.constant 0 : index
    %0 = vector.load %arg1[%c0, %c0_0] : memref<8x256xf32, #tpu.memory_space<vmem>>, vector<8x256xf32>
    %c0_1 = arith.constant 0 : index
    %c0_2 = arith.constant 0 : index
    %1 = vector.load %arg2[%c0_1, %c0_2] : memref<8x256xf32, #tpu.memory_space<vmem>>, vector<8x256xf32>
    tpu.vector_store %arg2[%c0_1, %c0_2], %0 {strides = array<i32>} : memref<8x256xf32, #tpu.memory_space<vmem>>, vector<8x256xf32>,
    return
  }
  func.func @transform_0(%arg0: i32) -> (i32, i32) {
    %c0_i32 = arith.constant 0 : i32
    %c0_i32_0 = arith.constant 0 : i32
    return %arg0, %c0_i32 : i32, i32
  }
  func.func @transform_1(%arg0: i32) -> (i32, i32) {
    %c0_i32 = arith.constant 0 : i32
    %c0_i32_0 = arith.constant 0 : i32
    return %arg0, %c0_i32 : i32, i32
  }
}

</mosaic_0001>

<bundles_post_ra>
// kernel: tpu_custom_call.1
= control target key start
LH: loop header
LB: loop body
LE: loop exit
PB: predicated region body
PF: predicated region fallthrough
CT: control target
= control target key end

     0   :  { %6 = vsyncpa [#allocation3], 0  ;;  %s104_s0 = inlined_call_operand.hbm [shape: f32[8,256], index: 0, kind: input, shape index: {}]   ;;  %s105_s1 = inlined_call_operand.hbm [shape: f32[8,256], index: 1, kind: output, shape index: {}]  }
   0x1   :  { %7 = vsyncpa [#allocation4], 0  ;;  %s86_s6 = smov [#allocation2]  }
   0x2   :  { %s14_s7 = sshll.u32 %s86_s6, 4  ;;  %s15_s7 = int_to_ptr.vmem [resolvable:$true] %s14_s7 }
   0x3   :  { %s50_s8 = scalar_lea.vmem %s15_s7, 256  ;;  %p55_p1 = scmp.lt.s32.totalorder %s15_s7, %s15_s7 }
   0x4   :  { %p51_p0 = scmp.ne.s32.totalorder %s15_s7, %s50_s8  ;;  %p56_p2 = scmp.lt.s32.totalorder %s50_s8, %s50_s8 }
   0x6   :  { %p57_p3 = por %p56_p2, %p55_p1 }
   0x8   :  { %p58_p4 = pnand %p57_p3, %p51_p0 }
   0xa   :  { %61 = shalt.err (!%p58_p4)
}
   0xb   :  { %17 = dma.hbm_to_vmem [thread:$0]  %s104_s0, 256, %s15_s7, [#allocation3]  }
   0xc   :  { %82 = dma.done.wait [#allocation3], 256  }
   0xd   :  { %83 = vsyncadd [#allocation3], 4294967040  ;;  %s87_s11 = smov [#allocation5]   ;;  %v21_v0 = vld [vmem:[#allocation2] sm:$0xff]  ;;  %v22_v1 = vld [vmem:[#allocation2 + $0x8] sm:$0xff] }
   0xe   :  { %s31_s12 = sshll.u32 %s87_s11, 4  ;;  %23 = vst [vmem:[#allocation5] sm:$0xff] %v21_v0  ;;  %24 = vst [vmem:[#allocation5 + $0x8] sm:$0xff] %v22_v1  ;;  %s32_s12 = int_to_ptr.vmem [resolvable:$true] %s31_s12 }
   0xf   :  { %s62_s13 = scalar_lea.vmem %s32_s12, 256  ;;  %p67_p6 = scmp.lt.s32.totalorder %s32_s12, %s32_s12 }
  0x10   :  { %p63_p5 = scmp.ne.s32.totalorder %s32_s12, %s62_s13  ;;  %p68_p7 = scmp.lt.s32.totalorder %s62_s13, %s62_s13 }
  0x12   :  { %p69_p8 = por %p68_p7, %p67_p6 }
  0x14   :  { %p70_p9 = pnand %p69_p8, %p63_p5 }
  0x16   :  { %73 = shalt.err (!%p70_p9)
}
  0x17   :  { %34 = dma.vmem_to_hbm [thread:$0]  %s32_s12, 256, %s105_s1, [#allocation4]  }
  0x18   :  { %84 = dma.done.wait [#allocation4], 256  }
  0x19   :  { %85 = vsyncadd [#allocation4], 4294967040 }
  0x1a   :  { %38 = vsyncpa [#allocation3], 1 }
  0x1b   :  { %39 = vsyncpa [#allocation4], 1 }

</bundles_post_ra>
